<compile_context>
chip_gen: v7x
topology: tpu7x:2x2x1
jax: 0.10.0
libtpu: 0.0.40
codegen_flags: <defaults>
</compile_context>

<pallas_src>
import random
from functools import partial

import jax
import jax.numpy as jnp
from jax.experimental import pallas as pl
from jax.experimental.pallas import tpu as pltpu


def _sum2d(a):
    # lane reduce then sublane reduce -> (1, 1); robust lowering on TPU.
    return jnp.sum(jnp.sum(a, axis=1, keepdims=True), axis=0, keepdims=True)


def _masked_reduce_kernel(fparams_ref, iparams_ref, x_ref, sum_ref, cnt_ref):
    """Accumulate global masked sum / count over the sample region.

    fparams_ref : SMEM (1,) f32 -> [threshold]
    iparams_ref : SMEM (1,) i32 -> [n_sample]  (# flat elements belonging to sample channels)
    x_ref       : VMEM (BR, L) tile of the flattened image
    sum_ref     : VMEM (1, 1) f32 accumulator (same block every grid step)
    cnt_ref     : VMEM (1, 1) i32 accumulator (exact integer count)
    """
    step = pl.program_id(0)

    @pl.when(step == 0)
    def _init():
        sum_ref[...] = jnp.zeros_like(sum_ref)
        cnt_ref[...] = jnp.zeros_like(cnt_ref)

    threshold = fparams_ref[0]
    n_sample = iparams_ref[0]

    br, lanes = x_ref.shape
    x = x_ref[...].astype(jnp.float32)
    row = jax.lax.broadcasted_iota(jnp.int32, (br, lanes), 0)
    col = jax.lax.broadcasted_iota(jnp.int32, (br, lanes), 1)
    flat = (step * br + row) * lanes + col
    valid = (flat < n_sample) & (x > threshold)

    sum_ref[...] += _sum2d(jnp.where(valid, x, 0.0))
    # Per-tile count is exact in f32 (tile <= 2^16 elements); accumulate exactly in int32.
    cnt_ref[...] += _sum2d(valid.astype(jnp.float32)).astype(jnp.int32)


def _apply_contrast_kernel(fparams_ref, iparams_ref, x_ref, o_ref):
    """out = where(is_sample & (x > thr), clip(x*alpha + mean*(1-alpha), 0, 1), x).

    fparams_ref : SMEM (3,) f32 -> [alpha, bias = mean*(1-alpha), threshold]
    iparams_ref : SMEM (1,) i32 -> [n_sample]
    Label-channel and padding elements (flat >= n_sample) pass through unchanged,
    which fuses the slice/concat of the original module into this kernel.
    """
    step = pl.program_id(0)
    scale = fparams_ref[0]
    bias = fparams_ref[1]
    threshold = fparams_ref[2]
    n_sample = iparams_ref[0]

    br, lanes = x_ref.shape
    xf = x_ref[...].astype(jnp.float32)
    row = jax.lax.broadcasted_iota(jnp.int32, (br, lanes), 0)
    col = jax.lax.broadcasted_iota(jnp.int32, (br, lanes), 1)
    flat = (step * br + row) * lanes + col
    valid = (flat < n_sample) & (xf > threshold)

    contrasted = jnp.clip(xf * scale + bias, 0.0, 1.0)
    o_ref[...] = jnp.where(valid, contrasted, xf).astype(o_ref.dtype)


def _choose_tiling(n_total):
    """Lane-dense tiling: lanes multiple of 128, block rows multiple of 8, tile <= 256 KB."""
    lanes = 512 if n_total >= 512 * 64 else 128
    rows = -(-n_total // lanes)
    rows8 = -(-rows // 8) * 8
    block_rows = 8 if rows8 <= 64 else 128
    padded_rows = -(-rows8 // block_rows) * block_rows
    return lanes, block_rows, padded_rows


@partial(jax.jit, static_argnames=("num_labels",))
def random_contrast_fused(image, alpha, threshold, *, num_labels):
    """Fused slice + masked global-mean contrast + clamp + concat on a (C, H, W) image."""
    c, h, w = image.shape
    assert 1 <= num_labels < c, "num_labels must leave at least one sample channel"
    n_total = c * h * w
    n_sample = (c - num_labels) * h * w

    lanes, block_rows, padded_rows = _choose_tiling(n_total)
    n_pad = padded_rows * lanes

    alpha = jnp.asarray(alpha, jnp.float32)
    threshold = jnp.asarray(threshold, jnp.float32)
    iparams = jnp.array([n_sample], dtype=jnp.int32)

    flat = image.reshape(-1)
    if n_pad > n_total:
        flat = jnp.pad(flat, (0, n_pad - n_total))
    x2d = flat.reshape(padded_rows, lanes)

    # ---- Pass 1: global masked sum / count, only over tiles touching the sample region. ----
    sample_rows = -(-n_sample // lanes)
    grid_reduce = max(1, -(-sample_rows // block_rows))

    sum_out, cnt_out = pl.pallas_call(
        _masked_reduce_kernel,
        out_shape=(
            jax.ShapeDtypeStruct((1, 1), jnp.float32),
            jax.ShapeDtypeStruct((1, 1), jnp.int32),
        ),
        grid=(grid_reduce,),
        in_specs=[
            pl.BlockSpec(memory_space=pltpu.SMEM),               # [threshold]
            pl.BlockSpec(memory_space=pltpu.SMEM),               # [n_sample]
            pl.BlockSpec((block_rows, lanes), lambda i: (i, 0)),
        ],
        out_specs=(
            pl.BlockSpec((1, 1), lambda i: (0, 0)),
            pl.BlockSpec((1, 1), lambda i: (0, 0)),
        ),
        compiler_params=pltpu.CompilerParams(dimension_semantics=("arbitrary",)),
    )(jnp.reshape(threshold, (1,)), iparams, x2d)

    cnt = cnt_out[0, 0].astype(jnp.float32)
    # If nothing exceeds the threshold the mask is all-False and pass 2 is a pass-through
    # (matches the `indices is None` branch); the max() only guards against 0/0.
    mean = sum_out[0, 0] / jnp.maximum(cnt, 1.0)
    bias = mean * (1.0 - alpha)                                   # hoisted: clip(x*alpha + bias)
    fparams_apply = jnp.stack([alpha, bias, threshold])

    # ---- Pass 2: elementwise apply over the whole padded image; labels pass through. ----
    grid_apply = padded_rows // block_rows

    out2d = pl.pallas_call(
        _apply_contrast_kernel,
        out_shape=jax.ShapeDtypeStruct((padded_rows, lanes), image.dtype),
        grid=(grid_apply,),
        in_specs=[
            pl.BlockSpec(memory_space=pltpu.SMEM),               # [alpha, bias, threshold]
            pl.BlockSpec(memory_space=pltpu.SMEM),               # [n_sample]
            pl.BlockSpec((block_rows, lanes), lambda i: (i, 0)),
        ],
        out_specs=pl.BlockSpec((block_rows, lanes), lambda i: (i, 0)),
        compiler_params=pltpu.CompilerParams(dimension_semantics=("parallel",)),
    )(fparams_apply, iparams, x2d)

    return out2d.reshape(-1)[:n_total].reshape(c, h, w)


class CustomRandomContrastPallas:
    """JAX/Pallas port of CustomRandomContrast (forward pass only).

    The p-gate and alpha draw use host-side Python randomness, like the original module;
    made deterministic here via an explicit seed.
    """

    def __init__(self, alpha_range, threshold=0.3, p=0.5, num_labels=3, verbose=False, seed=0):
        assert isinstance(alpha_range, list), "should be a list (range)"
        self.alpha_range = alpha_range
        self.threshold = threshold
        self.p = p
        self.num_labels = num_labels
        self.verbose = verbose
        self._rng = random.Random(seed)

    def __call__(self, image):
        if self._rng.random() < self.p:
            alpha = self._rng.uniform(self.alpha_range[0], self.alpha_range[1])
            return random_contrast_fused(
                image,
                jnp.asarray(alpha, jnp.float32),
                jnp.asarray(self.threshold, jnp.float32),
                num_labels=self.num_labels,
            )
        return image


def _reference(image, alpha, threshold, num_labels):
    """Pure-JAX reference of the same math (for correctness checking)."""
    sample = image[:-num_labels]
    targets = image[-num_labels:]
    mask = sample > threshold
    cnt = jnp.sum(mask).astype(jnp.float32)
    mean = jnp.sum(jnp.where(mask, sample, 0.0)) / jnp.maximum(cnt, 1.0)
    contrasted = jnp.clip((sample - mean) * alpha + mean, 0.0, 1.0)
    return jnp.concatenate([jnp.where(mask, contrasted, sample), targets], axis=0)


if __name__ == "__main__":
    key = jax.random.PRNGKey(0)
    k1, k2 = jax.random.split(key)

    # Case 1: 4 data + 3 label channels, 32x32 -> multi-tile reduce (grid=4) and apply (grid=7).
    # Case 2: 3 data + 3 label channels, 16x16 -> tiny: 1 reduce tile, 2 apply tiles.
    cases = [((7, 32, 32), 3, k1), ((6, 16, 16), 3, k2)]
    for shape, num_labels, kk in cases:
        image = jax.random.uniform(kk, shape, dtype=jnp.float32)
        alpha, threshold = 1.37, 0.3
        out = random_contrast_fused(
            image, jnp.float32(alpha), jnp.float32(threshold), num_labels=num_labels
        )
        out = jax.block_until_ready(out)
        ref = _reference(image, alpha, threshold, num_labels)
        assert out.shape == image.shape and out.dtype == image.dtype
        assert jnp.allclose(out, ref, atol=1e-5, rtol=1e-5), f"mismatch vs reference for {shape}"

    # Exercise the module-style wrapper (host-side p-gate + alpha draw); p=1 so it always runs.
    transform = CustomRandomContrastPallas(
        alpha_range=[0.5, 1.5], threshold=0.3, p=1.0, num_labels=3, seed=0
    )
    image = jax.random.uniform(k1, (7, 16, 16), dtype=jnp.float32)
    out = jax.block_until_ready(transform(image))
    assert out.shape == image.shape and out.dtype == image.dtype

    print("KERNEL_OK")
</pallas_src>

<mosaic_0001>
module attributes {stable_mosaic.version = 11 : i64} {
  func.func @_masked_reduce_kernel(%arg0: i32, %arg1: memref<1xf32, #tpu.memory_space<smem>>, %arg2: memref<1xi32, #tpu.memory_space<smem>>, %arg3: memref<8x128xf32, #tpu.memory_space<vmem>>, %arg4: memref<1x1xf32, #tpu.memory_space<vmem>>, %arg5: memref<1x1xi32, #tpu.memory_space<vmem>>) attributes {dimension_semantics = [#tpu.dimension_semantics<arbitrary>], iteration_bounds = array<i64: 4>, scalar_prefetch = 0 : i64, scratch_operands = 0 : i64, tpu.core_type = #tpu.core_type<tc>, window_params = [{transform_indices = @transform_0, window_bounds = array<i64: 1>}, {transform_indices = @transform_1, window_bounds = array<i64: 1>}, {transform_indices = @transform_2, window_bounds = array<i64: 8, 128>}, {pipeline_mode = #tpu.pipeline_mode<synchronous>, transform_indices = @transform_3, window_bounds = array<i64: 1, 1>}, {pipeline_mode = #tpu.pipeline_mode<synchronous>, transform_indices = @transform_4, window_bounds = array<i64: 1, 1>}]} {
    %c0_i32 = arith.constant 0 : i32
    %0 = arith.cmpi eq, %arg0, %c0_i32 : i32
    %1 = arith.extui %0 : i1 to i32
    %c0_i32_0 = arith.constant 0 : i32
    %2 = arith.cmpi ne, %1, %c0_i32_0 : i32
    scf.if %2 {
      %cst_16 = arith.constant 0.000000e+00 : f32
      %38 = vector.broadcast %cst_16 : f32 to vector<1x1xf32>
      %c0_17 = arith.constant 0 : index
      %c0_18 = arith.constant 0 : index
      %39 = vector.load %arg4[%c0_17, %c0_18] : memref<1x1xf32, #tpu.memory_space<vmem>>, vector<1x1xf32>
      tpu.vector_store %arg4[%c0_17, %c0_18], %38 {strides = array<i32>} : memref<1x1xf32, #tpu.memory_space<vmem>>, vector<1x1xf32>,
      %c0_i32_19 = arith.constant 0 : i32
      %40 = vector.broadcast %c0_i32_19 : i32 to vector<1x1xi32>
      %c0_20 = arith.constant 0 : index
      %c0_21 = arith.constant 0 : index
      %41 = vector.load %arg5[%c0_20, %c0_21] : memref<1x1xi32, #tpu.memory_space<vmem>>, vector<1x1xi32>
      tpu.vector_store %arg5[%c0_20, %c0_21], %40 {strides = array<i32>} : memref<1x1xi32, #tpu.memory_space<vmem>>, vector<1x1xi32>,
    } else {
    }
    %c0 = arith.constant 0 : index
    %3 = memref.load %arg1[%c0] : memref<1xf32, #tpu.memory_space<smem>>
    %c0_1 = arith.constant 0 : index
    %4 = memref.load %arg2[%c0_1] : memref<1xi32, #tpu.memory_space<smem>>
    %c0_2 = arith.constant 0 : index
    %c0_3 = arith.constant 0 : index
    %5 = vector.load %arg3[%c0_2, %c0_3] : memref<8x128xf32, #tpu.memory_space<vmem>>, vector<8x128xf32>
    %6 = tpu.iota {dimensions = array<i32: 0>} : vector<8x128xi32>
    %7 = tpu.iota {dimensions = array<i32: 1>} : vector<8x128xi32>
    %c8_i32 = arith.constant 8 : i32
    %8 = arith.muli %arg0, %c8_i32 : i32
    %9 = vector.broadcast %8 : i32 to vector<8x128xi32>
    %10 = arith.addi %9, %6 : vector<8x128xi32>
    %c128_i32 = arith.constant 128 : i32
    %11 = vector.broadcast %c128_i32 : i32 to vector<8x128xi32>
    %12 = arith.muli %10, %11 : vector<8x128xi32>
    %13 = arith.addi %12, %7 : vector<8x128xi32>
    %14 = vector.broadcast %4 : i32 to vector<8x128xi32>
    %15 = arith.cmpi slt, %13, %14 : vector<8x128xi32>
    %16 = vector.broadcast %3 : f32 to vector<8x128xf32>
    %17 = arith.cmpf ogt, %5, %16 : vector<8x128xf32>
    %18 = arith.andi %15, %17 : vector<8x128xi1>
    %c0_4 = arith.constant 0 : index
    %c0_5 = arith.constant 0 : index
    %19 = vector.load %arg4[%c0_4, %c0_5] : memref<1x1xf32, #tpu.memory_space<vmem>>, vector<1x1xf32>
    %cst = arith.constant 0.000000e+00 : f32
    %20 = vector.broadcast %cst : f32 to vector<8x128xf32>
    %21 = arith.select %18, %5, %20 : vector<8x128xi1>, vector<8x128xf32>
    %cst_6 = arith.constant dense<0.000000e+00> : vector<8xf32>
    %22 = vector.multi_reduction <add>, %21, %cst_6 [1] : vector<8x128xf32> to vector<8xf32>
    %23 = vector.shape_cast %22 : vector<8xf32> to vector<8x1xf32>
    %cst_7 = arith.constant dense<0.000000e+00> : vector<1xf32>
    %24 = vector.multi_reduction <add>, %23, %cst_7 [0] : vector<8x1xf32> to vector<1xf32>
    %25 = vector.shape_cast %24 : vector<1xf32> to vector<1x1xf32>
    %26 = arith.addf %19, %25 : vector<1x1xf32>
    %c0_8 = arith.constant 0 : index
    %c0_9 = arith.constant 0 : index
    %27 = vector.load %arg4[%c0_8, %c0_9] : memref<1x1xf32, #tpu.memory_space<vmem>>, vector<1x1xf32>
    tpu.vector_store %arg4[%c0_8, %c0_9], %26 {strides = array<i32>} : memref<1x1xf32, #tpu.memory_space<vmem>>, vector<1x1xf32>,
    %c0_10 = arith.constant 0 : index
    %c0_11 = arith.constant 0 : index
    %28 = vector.load %arg5[%c0_10, %c0_11] : memref<1x1xi32, #tpu.memory_space<vmem>>, vector<1x1xi32>
    %29 = arith.extui %18 : vector<8x128xi1> to vector<8x128xi32>
    %30 = arith.sitofp %29 : vector<8x128xi32> to vector<8x128xf32>
    %cst_12 = arith.constant dense<0.000000e+00> : vector<8xf32>
    %31 = vector.multi_reduction <add>, %30, %cst_12 [1] : vector<8x128xf32> to vector<8xf32>
    %32 = vector.shape_cast %31 : vector<8xf32> to vector<8x1xf32>
    %cst_13 = arith.constant dense<0.000000e+00> : vector<1xf32>
    %33 = vector.multi_reduction <add>, %32, %cst_13 [0] : vector<8x1xf32> to vector<1xf32>
    %34 = vector.shape_cast %33 : vector<1xf32> to vector<1x1xf32>
    %35 = arith.fptosi %34 : vector<1x1xf32> to vector<1x1xi32>
    %36 = arith.addi %28, %35 : vector<1x1xi32>
    %c0_14 = arith.constant 0 : index
    %c0_15 = arith.constant 0 : index
    %37 = vector.load %arg5[%c0_14, %c0_15] : memref<1x1xi32, #tpu.memory_space<vmem>>, vector<1x1xi32>
    tpu.vector_store %arg5[%c0_14, %c0_15], %36 {strides = array<i32>} : memref<1x1xi32, #tpu.memory_space<vmem>>, vector<1x1xi32>,
    return
  }
  func.func @transform_0(%arg0: i32) -> i32 {
    %c0_i32 = arith.constant 0 : i32
    %c0_i32_0 = arith.constant 0 : i32
    return %c0_i32 : i32
  }
  func.func @transform_1(%arg0: i32) -> i32 {
    %c0_i32 = arith.constant 0 : i32
    %c0_i32_0 = arith.constant 0 : i32
    return %c0_i32 : i32
  }
  func.func @transform_2(%arg0: i32) -> (i32, i32) {
    %c0_i32 = arith.constant 0 : i32
    %c0_i32_0 = arith.constant 0 : i32
    return %arg0, %c0_i32 : i32, i32
  }
  func.func @transform_3(%arg0: i32) -> (i32, i32) {
    %c0_i32 = arith.constant 0 : i32
    %c0_i32_0 = arith.constant 0 : i32
    %c0_i32_1 = arith.constant 0 : i32
    return %c0_i32, %c0_i32_0 : i32, i32
  }
  func.func @transform_4(%arg0: i32) -> (i32, i32) {
    %c0_i32 = arith.constant 0 : i32
    %c0_i32_0 = arith.constant 0 : i32
    %c0_i32_1 = arith.constant 0 : i32
    return %c0_i32, %c0_i32_0 : i32, i32
  }
}

module attributes {stable_mosaic.version = 11 : i64} {
  func.func @_apply_contrast_kernel(%arg0: i32, %arg1: memref<3xf32, #tpu.memory_space<smem>>, %arg2: memref<1xi32, #tpu.memory_space<smem>>, %arg3: memref<8x128xf32, #tpu.memory_space<vmem>>, %arg4: memref<8x128xf32, #tpu.memory_space<vmem>>) attributes {dimension_semantics = [#tpu.dimension_semantics<parallel>], iteration_bounds = array<i64: 7>, scalar_prefetch = 0 : i64, scratch_operands = 0 : i64, tpu.core_type = #tpu.core_type<tc>, window_params = [{transform_indices = @transform_0, window_bounds = array<i64: 3>}, {transform_indices = @transform_1, window_bounds = array<i64: 1>}, {transform_indices = @transform_2, window_bounds = array<i64: 8, 128>}, {transform_indices = @transform_3, window_bounds = array<i64: 8, 128>}]} {
    %c0 = arith.constant 0 : index
    %0 = memref.load %arg1[%c0] : memref<3xf32, #tpu.memory_space<smem>>
    %c1 = arith.constant 1 : index
    %1 = memref.load %arg1[%c1] : memref<3xf32, #tpu.memory_space<smem>>
    %c2 = arith.constant 2 : index
    %2 = memref.load %arg1[%c2] : memref<3xf32, #tpu.memory_space<smem>>
    %c0_0 = arith.constant 0 : index
    %3 = memref.load %arg2[%c0_0] : memref<1xi32, #tpu.memory_space<smem>>
    %c0_1 = arith.constant 0 : index
    %c0_2 = arith.constant 0 : index
    %4 = vector.load %arg3[%c0_1, %c0_2] : memref<8x128xf32, #tpu.memory_space<vmem>>, vector<8x128xf32>
    %5 = tpu.iota {dimensions = array<i32: 0>} : vector<8x128xi32>
    %6 = tpu.iota {dimensions = array<i32: 1>} : vector<8x128xi32>
    %c8_i32 = arith.constant 8 : i32
    %7 = arith.muli %arg0, %c8_i32 : i32
    %8 = vector.broadcast %7 : i32 to vector<8x128xi32>
    %9 = arith.addi %8, %5 : vector<8x128xi32>
    %c128_i32 = arith.constant 128 : i32
    %10 = vector.broadcast %c128_i32 : i32 to vector<8x128xi32>
    %11 = arith.muli %9, %10 : vector<8x128xi32>
    %12 = arith.addi %11, %6 : vector<8x128xi32>
    %13 = vector.broadcast %3 : i32 to vector<8x128xi32>
    %14 = arith.cmpi slt, %12, %13 : vector<8x128xi32>
    %15 = vector.broadcast %2 : f32 to vector<8x128xf32>
    %16 = arith.cmpf ogt, %4, %15 : vector<8x128xf32>
    %17 = arith.andi %14, %16 : vector<8x128xi1>
    %18 = vector.broadcast %0 : f32 to vector<8x128xf32>
    %19 = arith.mulf %4, %18 : vector<8x128xf32>
    %20 = vector.broadcast %1 : f32 to vector<8x128xf32>
    %21 = arith.addf %19, %20 : vector<8x128xf32>
    %cst = arith.constant 0.000000e+00 : f32
    %cst_3 = arith.constant 1.000000e+00 : f32
    %22 = vector.broadcast %cst : f32 to vector<8x128xf32>
    %23 = arith.maximumf %22, %21 : vector<8x128xf32>
    %24 = vector.broadcast %cst_3 : f32 to vector<8x128xf32>
    %25 = arith.minimumf %24, %23 : vector<8x128xf32>
    %26 = arith.select %17, %25, %4 : vector<8x128xi1>, vector<8x128xf32>
    %c0_4 = arith.constant 0 : index
    %c0_5 = arith.constant 0 : index
    %27 = vector.load %arg4[%c0_4, %c0_5] : memref<8x128xf32, #tpu.memory_space<vmem>>, vector<8x128xf32>
    tpu.vector_store %arg4[%c0_4, %c0_5], %26 {strides = array<i32>} : memref<8x128xf32, #tpu.memory_space<vmem>>, vector<8x128xf32>,
    return
  }
  func.func @transform_0(%arg0: i32) -> i32 {
    %c0_i32 = arith.constant 0 : i32
    %c0_i32_0 = arith.constant 0 : i32
    return %c0_i32 : i32
  }
  func.func @transform_1(%arg0: i32) -> i32 {
    %c0_i32 = arith.constant 0 : i32
    %c0_i32_0 = arith.constant 0 : i32
    return %c0_i32 : i32
  }
  func.func @transform_2(%arg0: i32) -> (i32, i32) {
    %c0_i32 = arith.constant 0 : i32
    %c0_i32_0 = arith.constant 0 : i32
    return %arg0, %c0_i32 : i32, i32
  }
  func.func @transform_3(%arg0: i32) -> (i32, i32) {
    %c0_i32 = arith.constant 0 : i32
    %c0_i32_0 = arith.constant 0 : i32
    return %arg0, %c0_i32 : i32, i32
  }
}

</mosaic_0001>

<bundles_post_ra>
// kernel: random_contrast_fused.3
= control target key start
LH: loop header
LB: loop body
LE: loop exit
PB: predicated region body
PF: predicated region fallthrough
CT: control target
= control target key end

     0   :  { %s397_s0 = inlined_call_operand.vmem [shape: f32[3], index: 0, kind: input, shape index: {}]   ;;  %s398_s1 = inlined_call_operand.<no memory space> [shape: s32[1], index: 1, kind: input, shape index: {}]   ;;  %s399_s2 = inlined_call_operand.vmem [shape: f32[56,128], index: 2, kind: input, shape index: {}]   ;;  %s400_s3 = inlined_call_operand.vmem [shape: f32[56,128], index: 3, kind: output, shape index: {}]  }
   0x1   :  { %8 = sst [smem:[#allocation2]] %s398_s1 }
   0x2   :  { %9 = vsyncpa [#allocation4], 0  ;;  %s357_s14 = smov 0  }
   0x3 LB: > { %s363_s15 = sadd.s32 4294967295, %s331_s14   ;;  %p275_p0 = scmp.ge.s32.totalorder %s331_s14, 1  ;;  %s331_s14 = sphi %s357_s14, %s15_s14  }
   0x4   : > { %p114_p1 = scmp.lt.s32.totalorder %s331_s14, 8  ;;  %s127_s1 = sshll.u32 %s397_s0, 4  ;;  %s128_s1 = int_to_ptr.vmem [resolvable:$true] %s127_s1 }
   0x5   : > { %p295_p3 = scmp.eq.s32.totalorder %s363_s15, 0  ;;  %s306_s19 = scalar_lea.vmem %s128_s1, 16 }
   0x6   : > { %p370_p2 = pnand %p275_p0, %p114_p1  ;;  %p307_p6 = scmp.ne.s32.totalorder %s128_s1, %s306_s19 }
   0x7   : > { %p314_p10 = scmp.lt.s32.totalorder %s128_s1, %s128_s1  ;;  %p315_p11 = scmp.lt.s32.totalorder %s306_s19, %s306_s19 }
   0x8   : > { %p291_p4 = pneg %p370_p2 }
   0x9   : > { %p316_p12 = por %p315_p11, %p314_p10 }
   0xa   : > { %p292_p5 = pnand %p295_p3, %p291_p4 }
   0xc   : > { %p308_p7 = pneg %p292_p5 }
   0xe   : > { %p309_p8 = pnand %p308_p7, %p307_p6 }
  0x10   : > { %p310_p9 = pneg %p309_p8 }
  0x12   : > { %p317_p13 = pnand %p316_p12, %p310_p9 }
  0x14   : > { %320 = shalt.err (!%p317_p13)
}
  0x15   : > { %s333_s20 = smov [#allocation3]   ;;  %150 = sbr.rel (%p370_p2) target bundleno = 48 (0x30), region = 32 }
  0x16   : > { %294 = dma.vmem_to_smem (!%p292_p5), %s128_s1, 16, %s333_s20, [#allocation4]  }
  0x1c   : > { %326 = dma.done.wait (%p295_p3), [#allocation4], 16  }
  0x1d   : > { %328 = vsyncadd (%p295_p3), [#allocation4], 4294967280 }
  0x1e   : > { %156 = sfence }
  0x1f   : > { %p173_p0 = scmp.lt.s32.totalorder %s363_s15, 6  ;;  %s181_s21 = sld [smem:[#allocation3]]  ;;  %v186_v0 = vlaneseq }
  0x20   : > { %s282_s22 = sld [smem:[#allocation3 + $0x1]]  ;;  %s283_s23 = sld [smem:[#allocation3 + $0x2]] }
  0x21   : > { %s174_s24 = scalar_select %p173_p0, %s363_s15, 6  ;;  %v187_v1 = vshrl.u32 %v186_v0, 7  ;;  %v189_v3 = vand.u32 127, %v186_v0 }
  0x22   : > { %s184_s25 = sld [smem:[#allocation2]]  ;;  %s284_s26 = sshll.u32 %s363_s15, 3 }
  0x23   : > { %s280_s27 = sshll.u32 %s174_s24, 3  ;;  %v191_v2 = vstv %s284_s26 }
  0x24   : > { %s176_s30 = scalar_lea.vmem %s399_s2, %s280_s27  ;;  %v192_v4 = vadd.s32 %v191_v2, %v187_v1  ;;  %s180_s6 = scalar_lea.vmem %s400_s3, %s280_s27 }
  0x25   : > { %v185_v5 = vld [vmem:[%s176_s30] sm:$0xff]  ;;  %v200_v6 = vstv %s181_s21 }
  0x26   : > { %v193_v7 = vmul.u32 128, %v192_v4  ;;  %v197_v8 = vstv %s283_s23  ;;  %v201_v9 = vmul.f32 %v200_v6, %v185_v5  ;;  %v202_v10 = vstv %s282_s22 }
  0x27   : > { %vm198_vm0 = vcmp.gt.f32.partialorder %v185_v5, %v197_v8 }
  0x28   : > { %v194_v11 = vadd.s32 %v193_v7, %v189_v3  ;;  %v195_v12 = vstv %s184_s25  ;;  %v203_v13 = vadd.f32 %v202_v10, %v201_v9 }
  0x2a   : > { %vm196_vm1 = vcmp.lt.s32.totalorder %v194_v11, %v195_v12  ;;  %v204_v14 = vmax.f32 %v203_v13, 0.0 }
  0x2b   : > { %vm199_vm2 = vmand %vm196_vm1, %vm198_vm0 }
  0x2c   : > { %v205_v15 = vmin.f32 %v204_v14, 1.0 }
  0x2e   : > { %v206_v16 = vsel %vm199_vm2, %v205_v15, %v185_v5 }
  0x2f   : > { %207 = vst [vmem:[%s180_s6] sm:$0xff] %v206_v16 }
  0x30 PF: > { %s15_s14 = sadd.s32 1, %s331_s14  }
  0x31   : > { %p12_p1 = scmp.ge.s32.totalorder %s15_s14, 9  }
  0x33   :  { %14 = sbr.rel (!%p12_p1) target bundleno = 3 (0x3), region = 67 }
  0x3a   :  { %227 = vsyncpa [#allocation4], 1 }
  0x3b   :  { %229 = vsyncpa [#allocation4 + $0x1], 1 }

// kernel: random_contrast_fused.2
= control target key start
LH: loop header
LB: loop body
LE: loop exit
PB: predicated region body
PF: predicated region fallthrough
CT: control target
= control target key end

     0   :  { %s519_s0 = inlined_call_operand.<no memory space> [shape: f32[1], index: 0, kind: input, shape index: {}]   ;;  %s520_s1 = inlined_call_operand.<no memory space> [shape: s32[1], index: 1, kind: input, shape index: {}]   ;;  %s521_s2 = inlined_call_operand.vmem [shape: f32[56,128], index: 2, kind: input, shape index: {}]   ;;  %s522_s3 = inlined_call_operand.hbm [shape: f32[1,1], index: 3, kind: output, shape index: {0}]   ;;  %s523_s4 = inlined_call_operand.hbm [shape: s32[1,1], index: 4, kind: output, shape index: {1}]  }
   0x1   :  { %10 = sst [smem:[#allocation2]] %s519_s0 }
   0x2   :  { %11 = sst [smem:[#allocation3]] %s520_s1 }
   0x3   :  { %12 = vsyncpa [#allocation5], 0 }
   0x4   :  { %13 = vsyncpa [#allocation7], 0  ;;  %s446_s19 = smov 0  }
   0x5 LB: > { %s452_s20 = sadd.s32 4294967295, %s408_s19   ;;  %p304_p0 = scmp.ge.s32.totalorder %s408_s19, 1  ;;  %s408_s19 = sphi %s446_s19, %s19_s19  }
   0x6   : > { %p158_p1 = scmp.lt.s32.totalorder %s408_s19, 5 }
   0x8   : > { %p159_p2 = pnand %p304_p0, %p158_p1 }
   0x9   : > { %p178_p3 = scmp.lt.s32.totalorder (!%p159_p2), %s452_s20, 6  ;;  %p306_p4 = scmp.ne.s32.totalorder (!%p159_p2), %s452_s20, 0 }
   0xa   : > { %162 = sbr.rel (%p159_p2) target bundleno = 236 (0xec), region = 32 }
  0x11   : > { %s179_s0 = scalar_select %p178_p3, %s452_s20, 6 }
  0x12   : > { %185 = sbr.rel (%p306_p4) target bundleno = 25 (0x19), region = 36  ;;  %vm186_vm0 = vcmask (!%p306_p4), 0   ;;  %v410_v0 = vmov (!%p306_p4), 0.0   ;;  %v411_v1 = vmov (!%p306_p4), 0  }
  0x13   : > { %s305_s1 = sshll.u32 %s179_s0, 3  ;;  %187 = vst.msk [vmem:[#allocation4] sm:$0x1] (!%p306_p4), %vm186_vm0, %v410_v0  ;;  %188 = vst.msk [vmem:[#allocation6] sm:$0x1] (!%p306_p4), %vm186_vm0, %v411_v1 }
  0x14   : > { %s181_s23 = scalar_lea.vmem %s521_s2, %s305_s1 }
  0x19 PF: > { %s189_s24 = sld [smem:[#allocation2]]  ;;  %v192_v2 = vlaneseq  ;;  %s307_s26 = sshll.u32 %s452_s20, 3  ;;  %v191_v7 = vld [vmem:[%s181_s23] sm:$0xff]  ;;  %v412_v12 = vmov 0.0   ;;  %vm217_vm4 = vcmask 0  }
  0x1a   : > { %s190_s25 = sld [smem:[#allocation3]]  ;;  %v197_v4 = vstv %s307_s26  ;;  %v206_v29 = vld [vmem:[#allocation4] sm:$0x1]  ;;  %s413_s27 = smov [#allocation4]   ;;  %v219_v30 = vld [vmem:[#allocation6] sm:$0x1] }
  0x1b   : > { %v193_v3 = vshrl.u32 %v192_v2, 7  ;;  %v195_v5 = vand.u32 127, %v192_v2  ;;  %s240_s28 = sshll.u32 %s413_s27, 4  ;;  %s414_s29 = smov [#allocation6]   ;;  %s241_s28 = int_to_ptr.vmem [resolvable:$true] %s240_s28 }
  0x1c   : > { %s251_s30 = sshll.u32 %s414_s29, 4  ;;  %p325_p5 = scmp.eq.s32.totalorder %s452_s20, 3  ;;  %s464_s30 = int_to_ptr.vmem [resolvable:$true] %s251_s30 }
  0x1d   : > { %v198_v6 = vadd.s32 %v197_v4, %v193_v3  ;;  %s342_s5 = scalar_lea.vmem %s241_s28, 16  ;;  %s348_s6 = scalar_lea.vmem %s241_s28, 32 }
  0x1e   : > { %p343_p6 = scmp.ne.s32.totalorder %s241_s28, %s342_s5  ;;  %p349_p9 = scmp.lt.s32.totalorder %s241_s28, %s241_s28 }
  0x1f   : > { %v199_v8 = vmul.u32 128, %v198_v6  ;;  %v203_v9 = vstv %s189_s24  ;;  %p350_p10 = scmp.lt.s32.totalorder %s348_s6, %s342_s5 }
  0x20   : > { %v201_v10 = vstv %s190_s25  ;;  %vm204_vm1 = vcmp.gt.f32.partialorder %v191_v7, %v203_v9  ;;  %p344_p7 = pnand %p343_p6, %p325_p5 }
  0x21   : > { %v200_v11 = vadd.s32 %v199_v8, %v195_v5  ;;  %p351_p11 = por %p350_p10, %p349_p9 }
  0x22   : > { %p345_p8 = pneg %p344_p7 }
  0x23   : > { %vm202_vm2 = vcmp.lt.s32.totalorder %v200_v11, %v201_v10 }
  0x24   : > { %vm205_vm3 = vmand %vm202_vm2, %vm204_vm1  ;;  %p352_p12 = pnand %p351_p11, %p345_p8 }
  0x25   : > { %v308_v13 = vsel %vm205_vm3, 1.0, %v412_v12  ;;  %v207_v14 = vsel %vm205_vm3, %v191_v7, 0.0 }
  0x26   : > { %222 = vadd.xlane.f32.xlu0 %v308_v13 }
  0x2a   : > { %208 = vadd.xlane.f32.xlu0 %v207_v14 }
  0xb3   : > { %v223_v15 = vpop.xlane.xlu0 %222 }
  0xb4   : > { %v224_v16 = vrot.slane %v223_v15, 4 }
  0xb6   : > { %v225_v17 = vadd.f32 %v224_v16, %v223_v15 }
  0xb7   : > { %v209_v18 = vpop.xlane.xlu0 %208 }
  0xb8   : > { %v226_v19 = vrot.slane %v225_v17, 2  ;;  %v210_v20 = vrot.slane %v209_v18, 4 }
  0xba   : > { %v227_v21 = vadd.f32 %v226_v19, %v225_v17  ;;  %v211_v22 = vadd.f32 %v210_v20, %v209_v18 }
  0xbc   : > { %v228_v23 = vrot.slane %v227_v21, 1  ;;  %v212_v24 = vrot.slane %v211_v22, 2 }
  0xbe   : > { %v229_v25 = vadd.f32 %v228_v23, %v227_v21  ;;  %v213_v26 = vadd.f32 %v212_v24, %v211_v22 }
  0xc0   : > { %v315_v27 = vtrunc.f32 %v229_v25  ;;  %v214_v28 = vrot.slane %v213_v26, 1 }
  0xc2   : > { %v316_v31 = vcvt.f32.s32 %v315_v27  ;;  %v215_v32 = vadd.f32 %v214_v28, %v213_v26 }
  0xc4   : > { %v216_v33 = vadd.f32 %v215_v32, %v206_v29  ;;  %v231_v34 = vadd.s32 %v316_v31, %v219_v30 }
  0xc6   : > { %218 = vst.msk [vmem:[#allocation4] sm:$0x1] %vm217_vm4, %v216_v33  ;;  %232 = vst.msk [vmem:[#allocation6] sm:$0x1] %vm217_vm4, %v231_v34 }
  0xc7   : > { %355 = shalt.err (!%p352_p12)
}
  0xc8   : > { %s356_s9 = scalar_lea.hbm %s522_s3, 16 }
  0xc9   : > { %p357_p13 = scmp.ne.s32.totalorder %s522_s3, %s356_s9  ;;  %p362_p2 = scmp.lt.u32.totalorder %s356_s9, %s522_s3 }
  0xcb   : > { %p358_p0 = pnand %p357_p13, %p325_p5 }
  0xcd   : > { %p359_p1 = pneg %p358_p0 }
  0xcf   : > { %p364_p3 = pnand %p362_p2, %p359_p1 }
  0xd1   : > { %367 = shalt.err (!%p364_p3)
}
  0xd2   : > { %318 = dma.vmem_to_hbm [thread:$0]  (%p325_p5), %s241_s28, 16, %s522_s3, [#allocation5]  }
  0xd3   : > { %s368_s16 = scalar_lea.vmem %s464_s30, 16  ;;  %s374_s17 = scalar_lea.vmem %s464_s30, 32 }
  0xd4   : > { %p369_p4 = scmp.ne.s32.totalorder %s464_s30, %s368_s16  ;;  %p375_p8 = scmp.lt.s32.totalorder %s464_s30, %s464_s30 }
  0xd5   : > { %p376_p9 = scmp.lt.s32.totalorder %s374_s17, %s368_s16 }
  0xd6   : > { %p370_p6 = pnand %p369_p4, %p325_p5 }
  0xd7   : > { %p377_p10 = por %p376_p9, %p375_p8 }
  0xd8   : > { %p371_p7 = pneg %p370_p6 }
  0xda   : > { %p378_p11 = pnand %p377_p10, %p371_p7 }
  0xdc   : > { %381 = shalt.err (!%p378_p11)
}
  0xdd   : > { %s382_s1 = scalar_lea.hbm %s523_s4, 16 }
  0xde   : > { %p383_p12 = scmp.ne.s32.totalorder %s523_s4, %s382_s1  ;;  %p388_p1 = scmp.lt.u32.totalorder %s382_s1, %s523_s4 }
  0xe0   : > { %p384_p13 = pnand %p383_p12, %p325_p5 }
  0xe2   : > { %p385_p0 = pneg %p384_p13 }
  0xe4   : > { %p390_p2 = pnand %p388_p1, %p385_p0 }
  0xe6   : > { %393 = shalt.err (!%p390_p2)
}
  0xe7   : > { %320 = dma.vmem_to_hbm [thread:$0]  (%p325_p5), %s464_s30, 16, %s523_s4, [#allocation7]  }
  0xe8   : > { %399 = dma.done.wait (%p325_p5), [#allocation5], 16  }
  0xe9   : > { %401 = vsyncadd (%p325_p5), [#allocation5], 4294967280 }
  0xea   : > { %403 = dma.done.wait (%p325_p5), [#allocation7], 16  }
  0xeb   : > { %405 = vsyncadd (%p325_p5), [#allocation7], 4294967280 }
  0xec PF: > { %s19_s19 = sadd.s32 1, %s408_s19  }
  0xed   : > { %p16_p3 = scmp.ge.s32.totalorder %s19_s19, 6  }
  0xef   :  { %18 = sbr.rel (!%p16_p3) target bundleno = 5 (0x5), region = 71 }
  0xf6   :  { %268 = vsyncpa [#allocation5], 1 }
  0xf7   :  { %270 = vsyncpa [#allocation5 + $0x1], 1 }
  0xf8   :  { %271 = vsyncpa [#allocation7], 1 }

</bundles_post_ra>
